<compile_context>
chip_gen: v5e
topology: v5e:2x2
jax: 0.10.0
libtpu: 0.0.40
codegen_flags: <defaults>
</compile_context>

<pallas_src>
import math

import jax
import jax.numpy as jnp
from jax import lax
from jax.experimental import pallas as pl
from jax.experimental.pallas import tpu as pltpu

# ---------------- model hyper-params (small, consistent with the module) ----
B = 2          # batch
S = 8          # sequence length
H = 32         # hidden size (d_model)
NH = 4         # attention heads
DK = H // NH   # per-head dim
EPS = 1e-6
NEG = -1e9
INV_SQRT_DK = 1.0 / math.sqrt(DK)


def transformer_block_kernel(x_ref, bias_ref, wqkv_ref, wo_ref, vec_ref, o_ref):
    """One grid step == one batch element: an (S, H) activation slab."""
    x = x_ref[...]                                  # (S, H) f32
    bias = bias_ref[...]                            # (S, S) f32 additive mask (0 / -1e9)

    vec = vec_ref[...]                              # (4, 3H) f32 packed small params
    b_qkv = vec[0:1, :]                             # (1, 3H) fused QKV bias
    ln_g = vec[1:2, :H]                             # (1, H)
    ln_b = vec[2:3, :H]                             # (1, H)
    b_o = vec[3:4, :H]                              # (1, H)

    # ---- LayerNorm (BERT-pytorch: unbiased var, eps added to std), f32 VPU --
    mean = jnp.mean(x, axis=-1, keepdims=True)
    var = jnp.sum((x - mean) ** 2, axis=-1, keepdims=True) * (1.0 / (H - 1))
    y = ln_g * (x - mean) / (jnp.sqrt(var) + EPS) + ln_b

    # ---- fused QKV projection: ONE MXU push, bf16 operands, f32 accum -------
    y_bf = y.astype(jnp.bfloat16)
    qkv = jnp.dot(y_bf, wqkv_ref[...],
                  preferred_element_type=jnp.float32) + b_qkv       # (S, 3H) f32

    ctx_heads = []
    for n in range(NH):                             # static unroll, NH = 4
        q_n = qkv[:, n * DK:(n + 1) * DK].astype(jnp.bfloat16)              # (S, DK)
        k_n = qkv[:, H + n * DK:H + (n + 1) * DK].astype(jnp.bfloat16)      # (S, DK)
        v_n = qkv[:, 2 * H + n * DK:2 * H + (n + 1) * DK].astype(jnp.bfloat16)

        # q @ k^T via contraction dims (no explicit transpose op in the jaxpr).
        s = lax.dot_general(q_n, k_n, (((1,), (1,)), ((), ())),
                            preferred_element_type=jnp.float32)             # (S, S)
        # Additive -1e9 mask is equivalent to the reference's where-replacement
        # because raw scores are O(1): exp underflows to exactly 0 either way.
        s = s * INV_SQRT_DK + bias
        s = s - jnp.max(s, axis=-1, keepdims=True)
        p = jnp.exp(s)
        p = p / jnp.sum(p, axis=-1, keepdims=True)   # exact normalization (f32)
        # TODO(synk): attention-prob dropout inside MHA is identity at eval time.

        ctx_heads.append(jnp.dot(p.astype(jnp.bfloat16), v_n,
                                 preferred_element_type=jnp.float32))       # (S, DK)

    # ---- concat heads along lanes + ONE output-projection matmul ------------
    ctx = jnp.concatenate(ctx_heads, axis=-1).astype(jnp.bfloat16)          # (S, H)
    attn = jnp.dot(ctx, wo_ref[...], preferred_element_type=jnp.float32) + b_o

    # Residual; sublayer dropout and the block's output dropout are identity.
    o_ref[...] = x + attn


def prepare_params(params):
    """One-time parameter prep: fuse/transpose weights (bf16 for the MXU) and
    pack all small f32 vectors into a single (4, 3H) slab (one DMA)."""
    ln_g, ln_b, wq, bq, wk, bk, wv, bv, wo, bo = params
    w_qkv = jnp.concatenate([wq.T, wk.T, wv.T], axis=1).astype(jnp.bfloat16)  # (H, 3H)
    w_o = wo.T.astype(jnp.bfloat16)                                           # (H, H)
    pad = jnp.zeros((1, 2 * H), jnp.float32)
    vec = jnp.concatenate([
        jnp.concatenate([bq, bk, bv], axis=1),   # row 0: fused QKV bias
        jnp.concatenate([ln_g, pad], axis=1),    # row 1: LayerNorm gamma
        jnp.concatenate([ln_b, pad], axis=1),    # row 2: LayerNorm beta
        jnp.concatenate([bo, pad], axis=1),      # row 3: output-proj bias
    ], axis=0)                                                                # (4, 3H)
    return w_qkv, w_o, vec


def build_attn_bias(mask):
    """(B,1,S,S) int mask -> compact (B,S,S) additive f32 bias (0 keep / -1e9 drop)."""
    return jnp.where(mask[:, 0] == 0, NEG, 0.0).astype(jnp.float32)


def transformer_block(x, mask, prepped):
    w_qkv, w_o, vec = prepped
    bias = build_attn_bias(mask)
    return pl.pallas_call(
        transformer_block_kernel,
        out_shape=jax.ShapeDtypeStruct((B, S, H), jnp.float32),
        grid=(B,),
        in_specs=[
            pl.BlockSpec((None, S, H), lambda b: (b, 0, 0)),   # x[b]
            pl.BlockSpec((None, S, S), lambda b: (b, 0, 0)),   # additive mask bias[b]
            pl.BlockSpec((H, 3 * H), lambda b: (0, 0)),        # fused QKV weights (bf16)
            pl.BlockSpec((H, H), lambda b: (0, 0)),            # Wo^T (bf16)
            pl.BlockSpec((4, 3 * H), lambda b: (0, 0)),        # packed small f32 params
        ],
        out_specs=pl.BlockSpec((None, S, H), lambda b: (b, 0, 0)),
        compiler_params=pltpu.CompilerParams(
            dimension_semantics=("parallel",)),                # v7x: 2nd TC not idle
    )(x, bias, w_qkv, w_o, vec)


def reference(x, mask, params):
    """Pure-JAX reference mirroring the PyTorch forward (eval mode), using the
    same bf16-operand / f32-accumulate matmul convention as the kernel."""
    ln_g, ln_b, wq, bq, wk, bk, wv, bv, wo, bo = params
    bf16, f32 = jnp.bfloat16, jnp.float32

    mean = jnp.mean(x, axis=-1, keepdims=True)
    var = jnp.sum((x - mean) ** 2, axis=-1, keepdims=True) / (H - 1)
    y = ln_g * (x - mean) / (jnp.sqrt(var) + EPS) + ln_b

    y_bf = y.astype(bf16)
    q = jnp.dot(y_bf, wq.T.astype(bf16), preferred_element_type=f32) + bq
    k = jnp.dot(y_bf, wk.T.astype(bf16), preferred_element_type=f32) + bk
    v = jnp.dot(y_bf, wv.T.astype(bf16), preferred_element_type=f32) + bv
    q = q.reshape(B, S, NH, DK).transpose(0, 2, 1, 3)
    k = k.reshape(B, S, NH, DK).transpose(0, 2, 1, 3)
    v = v.reshape(B, S, NH, DK).transpose(0, 2, 1, 3)

    scores = jnp.einsum("bhqd,bhkd->bhqk", q.astype(bf16), k.astype(bf16),
                        preferred_element_type=f32) / math.sqrt(DK)
    scores = jnp.where(mask == 0, NEG, scores)
    p = jax.nn.softmax(scores, axis=-1)
    ctx = jnp.einsum("bhqk,bhkd->bhqd", p.astype(bf16), v.astype(bf16),
                     preferred_element_type=f32)
    ctx = ctx.transpose(0, 2, 1, 3).reshape(B, S, H)
    attn = jnp.dot(ctx.astype(bf16), wo.T.astype(bf16),
                   preferred_element_type=f32) + bo
    return x + attn


if __name__ == "__main__":
    key = jax.random.PRNGKey(0)
    keys = jax.random.split(key, 8)

    x = jax.random.normal(keys[0], (B, S, H), dtype=jnp.float32)

    # mask: (B, 1, S, S); last two key positions of batch 1 are masked.
    mask = jnp.ones((B, 1, S, S), dtype=jnp.int32)
    mask = mask.at[1, 0, :, -2:].set(0)

    scale = 1.0 / math.sqrt(H)
    ln_g = jnp.ones((1, H), jnp.float32)
    ln_b = jnp.zeros((1, H), jnp.float32)
    wq = jax.random.normal(keys[1], (H, H), jnp.float32) * scale
    wk = jax.random.normal(keys[2], (H, H), jnp.float32) * scale
    wv = jax.random.normal(keys[3], (H, H), jnp.float32) * scale
    wo = jax.random.normal(keys[4], (H, H), jnp.float32) * scale
    bq = jax.random.normal(keys[5], (1, H), jnp.float32) * 0.02
    bk = jax.random.normal(keys[6], (1, H), jnp.float32) * 0.02
    bv = jax.random.normal(keys[7], (1, H), jnp.float32) * 0.02
    bo = jnp.zeros((1, H), jnp.float32)

    params = (ln_g, ln_b, wq, bq, wk, bk, wv, bv, wo, bo)
    prepped = prepare_params(params)   # one-time prep (fuse / transpose / pack)

    out = transformer_block(x, mask, prepped)
    out = jax.block_until_ready(out)

    ref = reference(x, mask, params)
    assert out.shape == (B, S, H)
    # Tolerance covers bf16 MXU operand rounding (mirrored in the reference) and
    # minor accumulation-order / transcendental differences.
    assert jnp.allclose(out, ref, atol=5e-3, rtol=5e-3), "mismatch vs reference"

    print("KERNEL_OK")
</pallas_src>

<mosaic_0001>
module attributes {stable_mosaic.version = 11 : i64} {
  func.func @transformer_block_kernel(%arg0: i32, %arg1: memref<1x8x32xf32, #tpu.memory_space<vmem>>, %arg2: memref<1x8x8xf32, #tpu.memory_space<vmem>>, %arg3: memref<32x96xbf16, #tpu.memory_space<vmem>>, %arg4: memref<32x32xbf16, #tpu.memory_space<vmem>>, %arg5: memref<4x96xf32, #tpu.memory_space<vmem>>, %arg6: memref<1x8x32xf32, #tpu.memory_space<vmem>>) attributes {dimension_semantics = [#tpu.dimension_semantics<parallel>], iteration_bounds = array<i64: 2>, scalar_prefetch = 0 : i64, scratch_operands = 0 : i64, tpu.core_type = #tpu.core_type<tc>, window_params = [{transform_indices = @transform_0, window_bounds = array<i64: 1, 8, 32>}, {transform_indices = @transform_1, window_bounds = array<i64: 1, 8, 8>}, {pipeline_mode = #tpu.pipeline_mode<synchronous>, transform_indices = @transform_2, window_bounds = array<i64: 32, 96>}, {pipeline_mode = #tpu.pipeline_mode<synchronous>, transform_indices = @transform_3, window_bounds = array<i64: 32, 32>}, {pipeline_mode = #tpu.pipeline_mode<synchronous>, transform_indices = @transform_4, window_bounds = array<i64: 4, 96>}, {transform_indices = @transform_5, window_bounds = array<i64: 1, 8, 32>}]} {
    %c0 = arith.constant 0 : index
    %c0_0 = arith.constant 0 : index
    %c0_1 = arith.constant 0 : index
    %0 = vector.load %arg1[%c0, %c0_0, %c0_1] : memref<1x8x32xf32, #tpu.memory_space<vmem>>, vector<1x8x32xf32>
    %1 = vector.shape_cast %0 : vector<1x8x32xf32> to vector<8x32xf32>
    %c0_2 = arith.constant 0 : index
    %c0_3 = arith.constant 0 : index
    %c0_4 = arith.constant 0 : index
    %2 = vector.load %arg2[%c0_2, %c0_3, %c0_4] : memref<1x8x8xf32, #tpu.memory_space<vmem>>, vector<1x8x8xf32>
    %3 = vector.shape_cast %2 : vector<1x8x8xf32> to vector<8x8xf32>
    %c0_5 = arith.constant 0 : index
    %c0_6 = arith.constant 0 : index
    %4 = vector.load %arg5[%c0_5, %c0_6] : memref<4x96xf32, #tpu.memory_space<vmem>>, vector<4x96xf32>
    %5 = vector.extract_strided_slice %4 {offsets = [0, 0], sizes = [1, 96], strides = [1, 1]} : vector<4x96xf32> to vector<1x96xf32>
    %6 = vector.extract_strided_slice %4 {offsets = [1, 0], sizes = [1, 32], strides = [1, 1]} : vector<4x96xf32> to vector<1x32xf32>
    %7 = vector.extract_strided_slice %4 {offsets = [2, 0], sizes = [1, 32], strides = [1, 1]} : vector<4x96xf32> to vector<1x32xf32>
    %8 = vector.extract_strided_slice %4 {offsets = [3, 0], sizes = [1, 32], strides = [1, 1]} : vector<4x96xf32> to vector<1x32xf32>
    %cst = arith.constant dense<0.000000e+00> : vector<8xf32>
    %9 = vector.multi_reduction <add>, %1, %cst [1] : vector<8x32xf32> to vector<8xf32>
    %10 = vector.shape_cast %9 : vector<8xf32> to vector<8x1xf32>
    %cst_7 = arith.constant 3.200000e+01 : f32
    %11 = vector.broadcast %cst_7 : f32 to vector<8x1xf32>
    %12 = arith.divf %10, %11 : vector<8x1xf32>
    %13 = vector.broadcast %12 : vector<8x1xf32> to vector<8x32xf32>
    %14 = arith.subf %1, %13 : vector<8x32xf32>
    %15 = arith.mulf %14, %14 : vector<8x32xf32>
    %cst_8 = arith.constant dense<0.000000e+00> : vector<8xf32>
    %16 = vector.multi_reduction <add>, %15, %cst_8 [1] : vector<8x32xf32> to vector<8xf32>
    %17 = vector.shape_cast %16 : vector<8xf32> to vector<8x1xf32>
    %cst_9 = arith.constant 0.0322580636 : f32
    %18 = vector.broadcast %cst_9 : f32 to vector<8x1xf32>
    %19 = arith.mulf %17, %18 : vector<8x1xf32>
    %20 = vector.broadcast %12 : vector<8x1xf32> to vector<8x32xf32>
    %21 = arith.subf %1, %20 : vector<8x32xf32>
    %22 = vector.broadcast %6 : vector<1x32xf32> to vector<8x32xf32>
    %23 = arith.mulf %22, %21 : vector<8x32xf32>
    %24 = math.sqrt %19 : vector<8x1xf32>
    %cst_10 = arith.constant 9.99999997E-7 : f32
    %25 = vector.broadcast %cst_10 : f32 to vector<8x1xf32>
    %26 = arith.addf %24, %25 : vector<8x1xf32>
    %27 = vector.broadcast %26 : vector<8x1xf32> to vector<8x32xf32>
    %28 = arith.divf %23, %27 : vector<8x32xf32>
    %29 = vector.broadcast %7 : vector<1x32xf32> to vector<8x32xf32>
    %30 = arith.addf %28, %29 : vector<8x32xf32>
    %31 = arith.truncf %30 : vector<8x32xf32> to vector<8x32xbf16>
    %c0_11 = arith.constant 0 : index
    %c0_12 = arith.constant 0 : index
    %32 = vector.load %arg3[%c0_11, %c0_12] : memref<32x96xbf16, #tpu.memory_space<vmem>>, vector<32x96xbf16>
    %cst_13 = arith.constant dense<0.000000e+00> : vector<8x96xf32>
    %33 = tpu.matmul %31, %32, %cst_13 {dimension_numbers = #tpu.dot_dimension_numbers<[1], [0], [0], [1], [0, 0, 1, 1], [], []>} : vector<8x32xbf16>, vector<32x96xbf16>, vector<8x96xf32> -> vector<8x96xf32>
    %34 = vector.broadcast %5 : vector<1x96xf32> to vector<8x96xf32>
    %35 = arith.addf %33, %34 : vector<8x96xf32>
    %36 = vector.extract_strided_slice %35 {offsets = [0, 0], sizes = [8, 8], strides = [1, 1]} : vector<8x96xf32> to vector<8x8xf32>
    %37 = arith.truncf %36 : vector<8x8xf32> to vector<8x8xbf16>
    %38 = vector.extract_strided_slice %35 {offsets = [0, 32], sizes = [8, 8], strides = [1, 1]} : vector<8x96xf32> to vector<8x8xf32>
    %39 = arith.truncf %38 : vector<8x8xf32> to vector<8x8xbf16>
    %40 = vector.extract_strided_slice %35 {offsets = [0, 64], sizes = [8, 8], strides = [1, 1]} : vector<8x96xf32> to vector<8x8xf32>
    %41 = arith.truncf %40 : vector<8x8xf32> to vector<8x8xbf16>
    %cst_14 = arith.constant dense<0.000000e+00> : vector<8x8xf32>
    %42 = tpu.matmul %37, %39, %cst_14 {dimension_numbers = #tpu.dot_dimension_numbers<[1], [1], [0], [0], [0, 0, 1, 0], [], []>} : vector<8x8xbf16>, vector<8x8xbf16>, vector<8x8xf32> -> vector<8x8xf32>
    %cst_15 = arith.constant 0.353553385 : f32
    %43 = vector.broadcast %cst_15 : f32 to vector<8x8xf32>
    %44 = arith.mulf %42, %43 : vector<8x8xf32>
    %45 = arith.addf %44, %3 : vector<8x8xf32>
    %cst_16 = arith.constant dense<0xFF800000> : vector<8xf32>
    %46 = vector.multi_reduction <maximumf>, %45, %cst_16 [1] : vector<8x8xf32> to vector<8xf32>
    %47 = vector.shape_cast %46 : vector<8xf32> to vector<8x1xf32>
    %48 = vector.broadcast %47 : vector<8x1xf32> to vector<8x8xf32>
    %49 = arith.subf %45, %48 : vector<8x8xf32>
    %50 = math.exp %49 : vector<8x8xf32>
    %cst_17 = arith.constant dense<0.000000e+00> : vector<8xf32>
    %51 = vector.multi_reduction <add>, %50, %cst_17 [1] : vector<8x8xf32> to vector<8xf32>
    %52 = vector.shape_cast %51 : vector<8xf32> to vector<8x1xf32>
    %53 = vector.broadcast %52 : vector<8x1xf32> to vector<8x8xf32>
    %54 = arith.divf %50, %53 : vector<8x8xf32>
    %55 = arith.truncf %54 : vector<8x8xf32> to vector<8x8xbf16>
    %cst_18 = arith.constant dense<0.000000e+00> : vector<8x8xf32>
    %56 = tpu.matmul %55, %41, %cst_18 {dimension_numbers = #tpu.dot_dimension_numbers<[1], [0], [0], [1], [0, 0, 1, 1], [], []>} : vector<8x8xbf16>, vector<8x8xbf16>, vector<8x8xf32> -> vector<8x8xf32>
    %57 = vector.extract_strided_slice %35 {offsets = [0, 8], sizes = [8, 8], strides = [1, 1]} : vector<8x96xf32> to vector<8x8xf32>
    %58 = arith.truncf %57 : vector<8x8xf32> to vector<8x8xbf16>
    %59 = vector.extract_strided_slice %35 {offsets = [0, 40], sizes = [8, 8], strides = [1, 1]} : vector<8x96xf32> to vector<8x8xf32>
    %60 = arith.truncf %59 : vector<8x8xf32> to vector<8x8xbf16>
    %61 = vector.extract_strided_slice %35 {offsets = [0, 72], sizes = [8, 8], strides = [1, 1]} : vector<8x96xf32> to vector<8x8xf32>
    %62 = arith.truncf %61 : vector<8x8xf32> to vector<8x8xbf16>
    %cst_19 = arith.constant dense<0.000000e+00> : vector<8x8xf32>
    %63 = tpu.matmul %58, %60, %cst_19 {dimension_numbers = #tpu.dot_dimension_numbers<[1], [1], [0], [0], [0, 0, 1, 0], [], []>} : vector<8x8xbf16>, vector<8x8xbf16>, vector<8x8xf32> -> vector<8x8xf32>
    %cst_20 = arith.constant 0.353553385 : f32
    %64 = vector.broadcast %cst_20 : f32 to vector<8x8xf32>
    %65 = arith.mulf %63, %64 : vector<8x8xf32>
    %66 = arith.addf %65, %3 : vector<8x8xf32>
    %cst_21 = arith.constant dense<0xFF800000> : vector<8xf32>
    %67 = vector.multi_reduction <maximumf>, %66, %cst_21 [1] : vector<8x8xf32> to vector<8xf32>
    %68 = vector.shape_cast %67 : vector<8xf32> to vector<8x1xf32>
    %69 = vector.broadcast %68 : vector<8x1xf32> to vector<8x8xf32>
    %70 = arith.subf %66, %69 : vector<8x8xf32>
    %71 = math.exp %70 : vector<8x8xf32>
    %cst_22 = arith.constant dense<0.000000e+00> : vector<8xf32>
    %72 = vector.multi_reduction <add>, %71, %cst_22 [1] : vector<8x8xf32> to vector<8xf32>
    %73 = vector.shape_cast %72 : vector<8xf32> to vector<8x1xf32>
    %74 = vector.broadcast %73 : vector<8x1xf32> to vector<8x8xf32>
    %75 = arith.divf %71, %74 : vector<8x8xf32>
    %76 = arith.truncf %75 : vector<8x8xf32> to vector<8x8xbf16>
    %cst_23 = arith.constant dense<0.000000e+00> : vector<8x8xf32>
    %77 = tpu.matmul %76, %62, %cst_23 {dimension_numbers = #tpu.dot_dimension_numbers<[1], [0], [0], [1], [0, 0, 1, 1], [], []>} : vector<8x8xbf16>, vector<8x8xbf16>, vector<8x8xf32> -> vector<8x8xf32>
    %78 = vector.extract_strided_slice %35 {offsets = [0, 16], sizes = [8, 8], strides = [1, 1]} : vector<8x96xf32> to vector<8x8xf32>
    %79 = arith.truncf %78 : vector<8x8xf32> to vector<8x8xbf16>
    %80 = vector.extract_strided_slice %35 {offsets = [0, 48], sizes = [8, 8], strides = [1, 1]} : vector<8x96xf32> to vector<8x8xf32>
    %81 = arith.truncf %80 : vector<8x8xf32> to vector<8x8xbf16>
    %82 = vector.extract_strided_slice %35 {offsets = [0, 80], sizes = [8, 8], strides = [1, 1]} : vector<8x96xf32> to vector<8x8xf32>
    %83 = arith.truncf %82 : vector<8x8xf32> to vector<8x8xbf16>
    %cst_24 = arith.constant dense<0.000000e+00> : vector<8x8xf32>
    %84 = tpu.matmul %79, %81, %cst_24 {dimension_numbers = #tpu.dot_dimension_numbers<[1], [1], [0], [0], [0, 0, 1, 0], [], []>} : vector<8x8xbf16>, vector<8x8xbf16>, vector<8x8xf32> -> vector<8x8xf32>
    %cst_25 = arith.constant 0.353553385 : f32
    %85 = vector.broadcast %cst_25 : f32 to vector<8x8xf32>
    %86 = arith.mulf %84, %85 : vector<8x8xf32>
    %87 = arith.addf %86, %3 : vector<8x8xf32>
    %cst_26 = arith.constant dense<0xFF800000> : vector<8xf32>
    %88 = vector.multi_reduction <maximumf>, %87, %cst_26 [1] : vector<8x8xf32> to vector<8xf32>
    %89 = vector.shape_cast %88 : vector<8xf32> to vector<8x1xf32>
    %90 = vector.broadcast %89 : vector<8x1xf32> to vector<8x8xf32>
    %91 = arith.subf %87, %90 : vector<8x8xf32>
    %92 = math.exp %91 : vector<8x8xf32>
    %cst_27 = arith.constant dense<0.000000e+00> : vector<8xf32>
    %93 = vector.multi_reduction <add>, %92, %cst_27 [1] : vector<8x8xf32> to vector<8xf32>
    %94 = vector.shape_cast %93 : vector<8xf32> to vector<8x1xf32>
    %95 = vector.broadcast %94 : vector<8x1xf32> to vector<8x8xf32>
    %96 = arith.divf %92, %95 : vector<8x8xf32>
    %97 = arith.truncf %96 : vector<8x8xf32> to vector<8x8xbf16>
    %cst_28 = arith.constant dense<0.000000e+00> : vector<8x8xf32>
    %98 = tpu.matmul %97, %83, %cst_28 {dimension_numbers = #tpu.dot_dimension_numbers<[1], [0], [0], [1], [0, 0, 1, 1], [], []>} : vector<8x8xbf16>, vector<8x8xbf16>, vector<8x8xf32> -> vector<8x8xf32>
    %99 = vector.extract_strided_slice %35 {offsets = [0, 24], sizes = [8, 8], strides = [1, 1]} : vector<8x96xf32> to vector<8x8xf32>
    %100 = arith.truncf %99 : vector<8x8xf32> to vector<8x8xbf16>
    %101 = vector.extract_strided_slice %35 {offsets = [0, 56], sizes = [8, 8], strides = [1, 1]} : vector<8x96xf32> to vector<8x8xf32>
    %102 = arith.truncf %101 : vector<8x8xf32> to vector<8x8xbf16>
    %103 = vector.extract_strided_slice %35 {offsets = [0, 88], sizes = [8, 8], strides = [1, 1]} : vector<8x96xf32> to vector<8x8xf32>
    %104 = arith.truncf %103 : vector<8x8xf32> to vector<8x8xbf16>
    %cst_29 = arith.constant dense<0.000000e+00> : vector<8x8xf32>
    %105 = tpu.matmul %100, %102, %cst_29 {dimension_numbers = #tpu.dot_dimension_numbers<[1], [1], [0], [0], [0, 0, 1, 0], [], []>} : vector<8x8xbf16>, vector<8x8xbf16>, vector<8x8xf32> -> vector<8x8xf32>
    %cst_30 = arith.constant 0.353553385 : f32
    %106 = vector.broadcast %cst_30 : f32 to vector<8x8xf32>
    %107 = arith.mulf %105, %106 : vector<8x8xf32>
    %108 = arith.addf %107, %3 : vector<8x8xf32>
    %cst_31 = arith.constant dense<0xFF800000> : vector<8xf32>
    %109 = vector.multi_reduction <maximumf>, %108, %cst_31 [1] : vector<8x8xf32> to vector<8xf32>
    %110 = vector.shape_cast %109 : vector<8xf32> to vector<8x1xf32>
    %111 = vector.broadcast %110 : vector<8x1xf32> to vector<8x8xf32>
    %112 = arith.subf %108, %111 : vector<8x8xf32>
    %113 = math.exp %112 : vector<8x8xf32>
    %cst_32 = arith.constant dense<0.000000e+00> : vector<8xf32>
    %114 = vector.multi_reduction <add>, %113, %cst_32 [1] : vector<8x8xf32> to vector<8xf32>
    %115 = vector.shape_cast %114 : vector<8xf32> to vector<8x1xf32>
    %116 = vector.broadcast %115 : vector<8x1xf32> to vector<8x8xf32>
    %117 = arith.divf %113, %116 : vector<8x8xf32>
    %118 = arith.truncf %117 : vector<8x8xf32> to vector<8x8xbf16>
    %cst_33 = arith.constant dense<0.000000e+00> : vector<8x8xf32>
    %119 = tpu.matmul %118, %104, %cst_33 {dimension_numbers = #tpu.dot_dimension_numbers<[1], [0], [0], [1], [0, 0, 1, 1], [], []>} : vector<8x8xbf16>, vector<8x8xbf16>, vector<8x8xf32> -> vector<8x8xf32>
    %120 = tpu.concatenate %56, %77, %98, %119 in 1 : vector<8x8xf32>, vector<8x8xf32>, vector<8x8xf32>, vector<8x8xf32> -> vector<8x32xf32>
    %121 = arith.truncf %120 : vector<8x32xf32> to vector<8x32xbf16>
    %c0_34 = arith.constant 0 : index
    %c0_35 = arith.constant 0 : index
    %122 = vector.load %arg4[%c0_34, %c0_35] : memref<32x32xbf16, #tpu.memory_space<vmem>>, vector<32x32xbf16>
    %cst_36 = arith.constant dense<0.000000e+00> : vector<8x32xf32>
    %123 = tpu.matmul %121, %122, %cst_36 {dimension_numbers = #tpu.dot_dimension_numbers<[1], [0], [0], [1], [0, 0, 1, 1], [], []>} : vector<8x32xbf16>, vector<32x32xbf16>, vector<8x32xf32> -> vector<8x32xf32>
    %124 = vector.broadcast %8 : vector<1x32xf32> to vector<8x32xf32>
    %125 = arith.addf %123, %124 : vector<8x32xf32>
    %126 = arith.addf %1, %125 : vector<8x32xf32>
    %c0_37 = arith.constant 0 : index
    %c0_38 = arith.constant 0 : index
    %c0_39 = arith.constant 0 : index
    %127 = vector.load %arg6[%c0_37, %c0_38, %c0_39] : memref<1x8x32xf32, #tpu.memory_space<vmem>>, vector<1x8x32xf32>
    %128 = vector.shape_cast %127 : vector<1x8x32xf32> to vector<8x32xf32>
    %129 = vector.shape_cast %126 : vector<8x32xf32> to vector<1x8x32xf32>
    tpu.vector_store %arg6[%c0_37, %c0_38, %c0_39], %129 {strides = array<i32>} : memref<1x8x32xf32, #tpu.memory_space<vmem>>, vector<1x8x32xf32>,
    return
  }
  func.func @transform_0(%arg0: i32) -> (i32, i32, i32) {
    %c0_i32 = arith.constant 0 : i32
    %c0_i32_0 = arith.constant 0 : i32
    %c0_i32_1 = arith.constant 0 : i32
    return %arg0, %c0_i32, %c0_i32_0 : i32, i32, i32
  }
  func.func @transform_1(%arg0: i32) -> (i32, i32, i32) {
    %c0_i32 = arith.constant 0 : i32
    %c0_i32_0 = arith.constant 0 : i32
    %c0_i32_1 = arith.constant 0 : i32
    return %arg0, %c0_i32, %c0_i32_0 : i32, i32, i32
  }
  func.func @transform_2(%arg0: i32) -> (i32, i32) {
    %c0_i32 = arith.constant 0 : i32
    %c0_i32_0 = arith.constant 0 : i32
    %c0_i32_1 = arith.constant 0 : i32
    return %c0_i32, %c0_i32_0 : i32, i32
  }
  func.func @transform_3(%arg0: i32) -> (i32, i32) {
    %c0_i32 = arith.constant 0 : i32
    %c0_i32_0 = arith.constant 0 : i32
    %c0_i32_1 = arith.constant 0 : i32
    return %c0_i32, %c0_i32_0 : i32, i32
  }
  func.func @transform_4(%arg0: i32) -> (i32, i32) {
    %c0_i32 = arith.constant 0 : i32
    %c0_i32_0 = arith.constant 0 : i32
    %c0_i32_1 = arith.constant 0 : i32
    return %c0_i32, %c0_i32_0 : i32, i32
  }
  func.func @transform_5(%arg0: i32) -> (i32, i32, i32) {
    %c0_i32 = arith.constant 0 : i32
    %c0_i32_0 = arith.constant 0 : i32
    %c0_i32_1 = arith.constant 0 : i32
    return %arg0, %c0_i32, %c0_i32_0 : i32, i32, i32
  }
}

</mosaic_0001>

<bundles_post_ra>
// kernel: tpu_custom_call.1
= control target key start
LH: loop header
LB: loop body
LE: loop exit
PB: predicated region body
PF: predicated region fallthrough
CT: control target
= control target key end

     0   :  { %s1603_s0 = inlined_call_operand.hbm [shape: f32[2,8,32], index: 0, kind: input, shape index: {}]   ;;  %s1604_s1 = inlined_call_operand.hbm [shape: f32[2,8,8], index: 1, kind: input, shape index: {}]   ;;  %s1605_s2 = inlined_call_operand.hbm [shape: bf16[32,96], index: 2, kind: input, shape index: {}]   ;;  %s1606_s3 = inlined_call_operand.hbm [shape: bf16[32,32], index: 3, kind: input, shape index: {}]   ;;  %s1607_s4 = inlined_call_operand.hbm [shape: f32[4,96], index: 4, kind: input, shape index: {}]   ;;  %s1608_s5 = inlined_call_operand.hbm [shape: f32[2,8,32], index: 5, kind: output, shape index: {}]  }
   0x1   :  { %1609 = sst [smem:[#allocation18_spill]] %s1605_s2 }
   0x2   :  { %1610 = sst [smem:[#allocation19_spill]] %s1606_s3 }
   0x3   :  { %1611 = sst [smem:[#allocation20_spill]] %s1607_s4 }
   0x4   :  { %10 = vsyncpa [#allocation3], 0 }
   0x5   :  { %12 = vsyncpa [#allocation3 + $0x1], 0 }
   0x6   :  { %13 = vsyncpa [#allocation6], 0 }
   0x7   :  { %15 = vsyncpa [#allocation6 + $0x1], 0 }
   0x8   :  { %16 = vsyncpa [#allocation9], 0 }
   0x9   :  { %17 = vsyncpa [#allocation4], 0 }
   0xa   :  { %19 = vsyncpa [#allocation4 + $0x1], 0  ;;  %s1344_s18 = smov 0   ;;  %s1346_s19 = smov 0  }
   0xb   :  { %s1348_s20 = smov 0   ;;  %s1350_s21 = smov 0  }
   0xc LB: > { %s1612_s2 = sld [smem:[#allocation18_spill]]  ;;  %s1368_s25 = sadd.s32 4294967295, %s1292_s21   ;;  %s1292_s21 = sphi %s1350_s21, %s1628_s21   ;;  %s1288_s20 = sphi %s1348_s20, %s1627_s20   ;;  %s1284_s19 = sphi %s1346_s19, %s1626_s19   ;;  %s1280_s18 = sphi %s1344_s18, %s1625_s18  }
   0xd   : > { %p893_p0 = scmp.ge.s32.totalorder %s1292_s21, 1  ;;  %p46_p1 = scmp.eq.s32.totalorder %s1368_s25, 0 }
   0xe   : > { %p171_p2 = scmp.lt.s32.totalorder %s1292_s21, 3  ;;  %s1294_s27 = smov [#allocation7]  }
   0xf   : > { %s184_s28 = sshll.u32 %s1294_s27, 4  ;;  %s1614_s3 = sld [smem:[#allocation19_spill]]  ;;  %s185_s28 = int_to_ptr.vmem [resolvable:$true] %s184_s28 }
  0x10   : > { %p1373_p3 = pnand %p893_p0, %p171_p2  ;;  %s1616_s4 = sld [smem:[#allocation20_spill]] }
  0x11   : > { %s1295_s11 = smov [#allocation8]   ;;  %s1296_s13 = smov 64  }
  0x12   : > { %s182_s24 = sshll.u32 %s1612_s2, 4  ;;  %p961_p4 = pneg %p1373_p3  ;;  %s183_s24 = int_to_ptr.hbm [resolvable:$true] %s182_s24 }
  0x13   : > { %s198_s12 = sshll.u32 %s1295_s11, 4  ;;  %s1297_s14 = smov 4   ;;  %s199_s12 = int_to_ptr.vmem [resolvable:$true] %s198_s12 }
  0x14   : > { %p1385_p6 = pnand %p961_p4, %p46_p1  ;;  %s1298_s15 = smov [#allocation10]  }
  0x15   : > { %s196_s6 = sshll.u32 %s1614_s3, 4  ;;  %s213_s16 = sshll.u32 %s1298_s15, 4  ;;  %s197_s6 = int_to_ptr.hbm [resolvable:$true] %s196_s6  ;;  %s214_s16 = int_to_ptr.vmem [resolvable:$true] %s213_s16 }
  0x16   : > { %s211_s10 = sshll.u32 %s1616_s4, 4  ;;  %s892_s17 = sadd.s32 4294967294, %s1292_s21   ;;  %s212_s10 = int_to_ptr.hbm [resolvable:$true] %s211_s10 }
  0x17   : > { %964 = dma.hbm_to_vmem [thread:$0]  (!%p1385_p6), %s183_s24, 256, %s185_s28, [#allocation6], %s1296_s13, %s1296_s13, %s1297_s14  }
  0x18   : > { %967 = dma.hbm_to_vmem [thread:$0]  (!%p1385_p6), %s197_s6, 256, %s199_s12, [#allocation9], %s1296_s13, %s1296_s13, %s1297_s14  }
  0x19   : > { %970 = dma.hbm_to_vmem [thread:$0]  (!%p1385_p6), %s212_s10, 64, %s214_s16, [#allocation9]  }
  0x1a   : > { %s1400_s22 = sadd.s32 1, %s1292_s21   ;;  %s32_s23 = sadd.s32 1, %s1288_s20 }
  0x1b   : > { %s29_s24 = ssub.s32 %s1292_s21, %s1400_s22  ;;  %p39_p7 = scmp.ne.s32.totalorder %s1288_s20, %s1284_s19 }
  0x1c   : > { %p30_p8 = scmp.eq.s32.totalorder %s29_s24, 0  ;;  %p40_p9 = scmp.eq.s32.totalorder %s1292_s21, 0 }
  0x1d   : > { %p45_p10 = scmp.ne.s32.totalorder %s1284_s19, %s1280_s18  ;;  %p158_p11 = scmp.eq.s32.totalorder %s1368_s25, 1 }
  0x1e   : > { %s1412_s27 = scalar_select %p30_p8, %s1288_s20, %s32_s23  }
  0x1f   : > { %p1414_p12 = por %p40_p9, %p39_p7  ;;  %p1420_p13 = por %p46_p1, %p45_p10 }
  0x20   : > { %1617 = sst [smem:[#allocation17_spill]] %s1412_s27  ;;  %p1424_p0 = por %p158_p11, %p39_p7 }
  0x21   : > { %p164_p2 = scmp.eq.s32.totalorder %s892_s17, 1  ;;  %p985_p4 = scmp.lt.s32.totalorder %s1292_s21, 2 }
  0x22   : > { %s224_s6 = sand.u32 1, %s1288_s20   ;;  %s899_s9 = sshll.u32 %s1292_s21, 3 }
  0x23   : > { %p1430_p6 = por %p164_p2, %p45_p10  ;;  %s898_s8 = sshll.u32 %s224_s6, 3 }
  0x24   : > { %s232_s12 = scalar_lea.hbm %s1603_s0, %s899_s9  ;;  %s228_s14 = scalar_lea.vmem [#allocation2], %s898_s8 }
  0x25   : > { %s234_s13 = sshll.u32 %s232_s12, 4  ;;  %s236_s15 = sshll.u32 %s228_s14, 4  ;;  %s235_s13 = int_to_ptr.hbm [resolvable:$true] %s234_s13  ;;  %s237_s15 = int_to_ptr.vmem [resolvable:$true] %s236_s15 }
  0x26   : > { %p1440_p7 = pnand %p985_p4, %p1414_p12  ;;  %s251_s24 = scalar_lea.hbm %s1604_s1, %s899_s9 }
  0x27   : > { %s243_s2 = sand.u32 1, %s1292_s21   ;;  %s225_s3 = scalar_lea.sflag [#allocation3], %s224_s6 }
  0x28   : > { %s1154_s10 = sshra.s32 %s235_s13, 4  ;;  %p1158_p9 = pneg %p1440_p7  ;;  %s1155_s10 = int_to_ptr.hbm [resolvable:$true] %s1154_s10 }
  0x29   : > { %s1156_s11 = scalar_lea.hbm %s1155_s10, 8  ;;  %s1161_s14 = scalar_lea.hbm %s1603_s0, 16 }
  0x2a   : > { %p1157_p8 = scmp.ne.s32.totalorder %s1155_s10, %s1156_s11  ;;  %p1162_p12 = scmp.lt.s32.totalorder %s1155_s10, %s1603_s0 }
  0x2b   : > { %p1163_p2 = scmp.lt.s32.totalorder %s1161_s14, %s1156_s11 }
  0x2c   : > { %p1159_p10 = pnand %p1158_p9, %p1157_p8 }
  0x2d   : > { %p1164_p4 = por %p1163_p2, %p1162_p12 }
  0x2e   : > { %p1160_p11 = pneg %p1159_p10 }
  0x30   : > { %p1165_p5 = pnand %p1164_p4, %p1160_p11 }
  0x32   : > { %1168 = shalt.err (!%p1165_p5)
}
  0x33   : > { %974 = dma.hbm_to_vmem [thread:$0]  (!%p1440_p7), %s235_s13, 128, %s237_s15, %s225_s3  }
  0x34   : > { %s253_s6 = sshll.u32 %s251_s24, 4  ;;  %s247_s9 = scalar_lea.vmem [#allocation5], %s898_s8  ;;  %s254_s6 = int_to_ptr.hbm [resolvable:$true] %s253_s6 }
  0x35   : > { %s255_s4 = sshll.u32 %s247_s9, 4  ;;  %s244_s27 = scalar_lea.sflag [#allocation6], %s243_s2  ;;  %s256_s4 = int_to_ptr.vmem [resolvable:$true] %s255_s4 }
  0x36   : > { %s1184_s28 = sshra.s32 %s254_s6, 4  ;;  %s1191_s14 = scalar_lea.hbm %s1604_s1, 16  ;;  %s1185_s28 = int_to_ptr.hbm [resolvable:$true] %s1184_s28 }
  0x37   : > { %s1186_s12 = scalar_lea.hbm %s1185_s28, 8  ;;  %p1192_p5 = scmp.lt.s32.totalorder %s1185_s28, %s1604_s1 }
  0x38   : > { %p1187_p8 = scmp.ne.s32.totalorder %s1185_s28, %s1186_s12  ;;  %p1193_p11 = scmp.lt.s32.totalorder %s1191_s14, %s1186_s12 }
  0x3a   : > { %p1189_p10 = pnand %p1187_p8, %p1158_p9  ;;  %p1194_p2 = por %p1193_p11, %p1192_p5 }
  0x3c   : > { %p1190_p12 = pneg %p1189_p10 }
  0x3e   : > { %p1195_p4 = pnand %p1194_p2, %p1190_p12 }
  0x40   : > { %1198 = shalt.err (!%p1195_p4)
}
  0x41   : > { %977 = dma.hbm_to_vmem [thread:$0]  (!%p1440_p7), %s254_s6, 128, %s256_s4, %s244_s27  }
  0x42   : > { %264 = sbr.rel (%p1373_p3) target bundleno = 1419 (0x58b), region = 40  ;;  %s1475_s2 = sand.u32 (!%p1373_p3), 1, %s1284_s19  }
  0x43   : > { %s1478_s8 = sshll.u32 (!%p1373_p3), %s1475_s2, 3  ;;  %s267_s13 = scalar_lea.sflag (!%p1373_p3), [#allocation3], %s1475_s2 }
  0x44   : > { %s270_s15 = scalar_lea.vmem (!%p1373_p3), [#allocation2], %s1478_s8 }
  0x47   : > { %1259 = dma.done.wait (%p1420_p13), %s267_s13, 128  }
  0x48   : > { %1261 = vsyncadd (%p1420_p13), %s267_s13, 4294967168  ;;  %s276_s4 = sand.u32 1, %s1368_s25   ;;  %s280_s27 = scalar_lea.vmem [#allocation5], %s1478_s8 }
  0x49   : > { %s277_s26 = scalar_lea.sflag [#allocation6], %s276_s4 }
  0x4a   : > { %1263 = dma.done.wait (%p1420_p13), %s277_s26, 128  }
  0x4b   : > { %1265 = vsyncadd (%p1420_p13), %s277_s26, 4294967168 }
  0x4c   : > { %1267 = dma.done.wait (%p46_p1), [#allocation6], 256  }
  0x4d   : > { %1269 = vsyncadd (%p46_p1), [#allocation6], 4294967040 }
  0x4e   : > { %1271 = dma.done.wait (%p46_p1), [#allocation9], 320  }
  0x4f   : > { %1273 = vsyncadd (%p46_p1), [#allocation9], 4294966976  ;;  %vm332_vm0 = vcmask 261120   ;;  %v1500_v0 = vld [vmem:[%s270_s15] sm:$0xff]  ;;  %v1299_v2 = vmov 32.0   ;;  %s1300_s29 = smov 104  }
  0x50   : > { %v333_v1 = vsel %vm332_vm0, %v1500_v0, 0.0  ;;  %1042 = vrcp.f32 %v1299_v2  ;;  %v940_v14 = vld [vmem:[#allocation7 + $0x8] sm:$0xff]  ;;  %v939_v15 = vld [vmem:[#allocation7] sm:$0xff]  ;;  %s1301_s16 = smov 120   ;;  %s1302_s24 = smov 96   ;;  %vm420_vm8 = vcmask 64512  }
  0x51   : > { %334 = vadd.xlane.f32.xlu0 %v333_v1  ;;  %409 = vmatpush.bf16.msra.mxu0 %v940_v14  ;;  %v1506_v31 = vld [vmem:[#allocation10] sm:$0xf]  ;;  %s1303_s23 = smov 72   ;;  %s1304_s6 = smov 88   ;;  %v330_v63 = vld [vmem:[%s280_s27] sm:$0xff]  ;;  %vm472_vm13 = vcmask 1043456  }
  0x52   : > { %v350_v34 = vperm.slane %v1506_v31, 1  ;;  %v380_v41 = vperm.slane %v1506_v31, 2  ;;  %v387_v46 = vperm.slane %v1506_v31, 0  ;;  %s1305_s9 = smov 112   ;;  %s1306_s28 = smov 80  }
  0x53   : > { %s1307_s12 = smov 64   ;;  %s1308_s10 = smov 48  }
  0x54   : > { %s1309_s11 = smov 56   ;;  %s1310_s14 = smov 40  }
  0x55   : > { %410 = vmatpush.bf16.msra.mxu0 %v939_v15  ;;  %s1311_s17 = smov 16   ;;  %s1312_s3 = smov 8  }
  0x56   : > { %v1043_v3 = vpop.eup %1042  ;;  %s1313_s13 = smov 24   ;;  %s936_s15 = sshll.u32 %s1368_s25, 3 }
  0x57   : > { %v337_v4 = vmul.f32 32.0, %v1043_v3  ;;  %vm341_vm1 = vweird.f32 %v1043_v3  ;;  %s766_s27 = scalar_lea.hbm %s1608_s5, %s936_s15 }
  0x59   : > { %v338_v5 = vsub.f32 1.0, %v337_v4 }
  0x5b   : > { %v339_v6 = vmul.f32 %v1043_v3, %v338_v5 }
  0x5d   : > { %v340_v7 = vadd.f32 %v1043_v3, %v339_v6 }
  0x5f   : > { %v342_v8 = vsel %vm341_vm1, %v1043_v3, %v340_v7 }
  0xc4   : > { %v335_v9 = vpop.xlane.xlu0 %334 }
  0xc5   : > { %v343_v10 = vmul.f32 %v342_v8, %v335_v9 }
  0xc7   : > { %v344_v11 = vsub.f32 %v1500_v0, %v343_v10 }
  0xc9   : > { %v345_v12 = vmul.f32 %v344_v11, %v344_v11  ;;  %v351_v39 = vmul.f32 %v350_v34, %v344_v11 }
  0xcb   : > { %v346_v13 = vsel %vm332_vm0, %v345_v12, 0.0 }
  0xcc   : > { %347 = vadd.xlane.f32.xlu0 %v346_v13 }
 0x13f   : > { %v348_v16 = vpop.xlane.xlu0 %347 }
 0x140   : > { %v349_v17 = vmul.f32 0.032258064, %v348_v16 }
 0x142   : > { %1044 = vrsqrt.f32 %v349_v17  ;;  %vm359_vm2 = vcmp.eq.f32.partialorder %v349_v17, inf  ;;  %v362_v25 = vand.u32 2147483648, %v349_v17  ;;  %vm361_vm3 = vcmp.eq.f32.partialorder %v349_v17, 0.0 }
 0x148   : > { %v1045_v18 = vpop.eup %1044 }
 0x149   : > { %v353_v19 = vmul.f32 %v1045_v18, %v349_v17 }
 0x14b   : > { %v354_v20 = vmul.f32 %v1045_v18, %v353_v19 }
 0x14d   : > { %v355_v21 = vmul.f32 0.5, %v354_v20 }
 0x14f   : > { %v356_v22 = vsub.f32 1.5, %v355_v21 }
 0x151   : > { %v357_v23 = vmul.f32 %v1045_v18, %v356_v22 }
 0x153   : > { %v358_v24 = vmul.f32 %v357_v23, %v349_v17 }
 0x155   : > { %v360_v26 = vsel %vm359_vm2, %v349_v17, %v358_v24 }
 0x156   : > { %v363_v27 = vsel %vm361_vm3, %v362_v25, %v360_v26 }
 0x157   : > { %v364_v28 = vadd.f32 1e-06, %v363_v27 }
 0x159   : > { %1046 = vrcp.f32 %v364_v28  ;;  %v376_v33 = vand.u32 2147483648, %v364_v28  ;;  %v374_v36 = vand.u32 2147483647, %v364_v28  ;;  %vm370_vm5 = vweird.f32 %v364_v28 }
 0x15b   : > { %v377_v38 = vor.u32 1.1754944e-38, %v376_v33  ;;  %vm375_vm7 = vcmp.eq.f32.partialorder %v374_v36, 8.507059e+37 }
 0x15f   : > { %v1047_v29 = vpop.eup %1046 }
 0x160   : > { %v366_v30 = vmul.f32 %v1047_v29, %v364_v28  ;;  %vm371_vm4 = vweird.f32 %v1047_v29 }
 0x161   : > { %vm372_vm6 = vmor %vm370_vm5, %vm371_vm4 }
 0x162   : > { %v367_v32 = vsub.f32 1.0, %v366_v30 }
 0x164   : > { %v368_v35 = vmul.f32 %v1047_v29, %v367_v32 }
 0x166   : > { %v369_v37 = vadd.f32 %v1047_v29, %v368_v35 }
 0x168   : > { %v373_v40 = vsel %vm372_vm6, %v1047_v29, %v369_v37 }
 0x169   : > { %v378_v42 = vsel %vm375_vm7, %v377_v38, %v373_v40 }
 0x16a   : > { %v379_v43 = vmul.f32 %v378_v42, %v351_v39 }
 0x16c   : > { %v381_v44 = vadd.f32 %v380_v41, %v379_v43 }
 0x16e   : > { %v382_v45 = vpack.c.bf16 %v381_v44, %v381_v44 }
 0x170   : > { %917 = vmatmul.msk.bf16.vlgmr.msra.gmra.mxu0 %vm332_vm0, %v382_v45 }
 0x1ed   : > { %v412_v47 = vpop.f32.mrf.mxu0 }
 0x1ee   : > { %v413_v48 = vadd.f32 %v412_v47, %v387_v46 }
 0x1f0   : > { %v1512_v49 = vpack.c.bf16 %v413_v48, %v413_v48 }
 0x1f2   : > { %631 = vrot.lane.b32.xlu0 %v1512_v49, %s1300_s29  ;;  %489 = vrot.lane.b32.xlu2 %v1512_v49, %s1301_s16  ;;  %s327_s29 = scalar_lea.vmem [#allocation11], %s1478_s8  ;;  %s1234_s8 = scalar_lea.hbm %s1608_s5, 16 }
 0x1f3   : > { %418 = vrot.lane.b32.xlu1 %v1512_v49, %s1302_s24  ;;  %s768_s16 = sshll.u32 %s327_s29, 4  ;;  %s770_s24 = sshll.u32 %s766_s27, 4  ;;  %s769_s16 = int_to_ptr.vmem [resolvable:$true] %s768_s16  ;;  %s771_s24 = int_to_ptr.hbm [resolvable:$true] %s770_s24 }
 0x1f4   : > { %s1228_s25 = sshra.s32 %s771_s24, 4  ;;  %s1229_s25 = int_to_ptr.hbm [resolvable:$true] %s1228_s25 }
 0x1f5   : > { %v414_v50 = vpop.f32.mrf.mxu0  ;;  %p1235_p7 = scmp.lt.s32.totalorder %s1229_s25, %s1608_s5 }
 0x1fa   : > { %633 = vrot.lane.b32.xlu2 %v1512_v49, %s1303_s23  ;;  %s756_s23 = scalar_lea.sflag [#allocation4], %s1475_s2 }
 0x1fb   : > { %491 = vrot.lane.b32.xlu1 %v1512_v49, %s1304_s6  ;;  %s1230_s6 = scalar_lea.hbm %s1229_s25, 8 }
 0x1fc   : > { %p1231_p1 = scmp.ne.s32.totalorder %s1229_s25, %s1230_s6  ;;  %p1236_p9 = scmp.lt.s32.totalorder %s1234_s8, %s1230_s6 }
 0x1fe   : > { %p1232_p3 = pnand %p1231_p1, %p1424_p0  ;;  %p1237_p8 = por %p1236_p9, %p1235_p7 }
 0x200   : > { %p1233_p13 = pneg %p1232_p3 }
 0x202   : > { %560 = vrot.lane.b32.xlu2 %v1512_v49, %s1305_s9  ;;  %p1238_p10 = pnand %p1237_p8, %p1233_p13 }
 0x203   : > { %562 = vrot.lane.b32.xlu1 %v1512_v49, %s1306_s28 }
 0x24c   : > { %v490_v51 = vpop.permute.xlu2 %489 }
 0x254   : > { %v634_v54 = vpop.permute.xlu2 %633 }
 0x255   : > { %v639_v57 = vsel %vm420_vm8, %v634_v54, 0 }
 0x25c   : > { %v561_v60 = vpop.permute.xlu2 %560 }
 0x264   : > { %v632_v61 = vpop.permute.xlu0 %631 }
 0x265   : > { %v419_v52 = vpop.permute.xlu1 %418 }
 0x266   : > { %v425_v53 = vsel %vm420_vm8, %v419_v52, 0 }
 0x267   : > { %434 = vmatpush.bf16.xpose.msra.mxu1 %v425_v53 }
 0x26d   : > { %v492_v55 = vpop.permute.xlu1 %491 }
 0x26e   : > { %918 = vmatmul.msk.bf16.vlgmr.msra.gmra.mxu1 %vm420_vm8, %v1512_v49  ;;  %v497_v56 = vsel %vm420_vm8, %v492_v55, 0 }
 0x26f   : > { %506 = vmatpush.bf16.xpose.msra.mxu3 %v497_v56 }
 0x275   : > { %v563_v58 = vpop.permute.xlu1 %562 }
 0x276   : > { %920 = vmatmul.msk.bf16.vlgmr.msra.gmra.mxu3 %vm420_vm8, %v490_v51  ;;  %v568_v59 = vsel %vm420_vm8, %v563_v58, 0 }
 0x277   : > { %648 = vmatpush.bf16.xpose.msrb.mxu3 %v639_v57  ;;  %577 = vmatpush.bf16.xpose.msrb.mxu0 %v568_v59 }
 0x27e   : > { %922 = vmatmul.msk.bf16.vlgmr.msrb.gmra.mxu0 %vm420_vm8, %v561_v60 }
 0x286   : > { %924 = vmatmul.msk.bf16.vlgmr.msrb.gmra.mxu3 %vm420_vm8, %v632_v61 }
 0x2eb   : > { %v436_v62 = vpop.f32.mrf.mxu1 }
 0x2ec   : > { %v440_v1 = vmul.f32 0.35355338, %v436_v62 }
 0x2ee   : > { %v441_v2 = vadd.f32 %v440_v1, %v330_v63 }
 0x2f0   : > { %v442_v3 = vsel %vm420_vm8, %v441_v2, -inf }
 0x2f1   : > { %443 = vmax.xlane.f32.xlu1 %v442_v3 }
 0x2f3   : > { %v438_v4 = vpop.f32.mrf.mxu1 }
 0x2f9   : > { %v508_v5 = vpop.f32.mrf.mxu3 }
 0x2fa   : > { %v512_v6 = vmul.f32 0.35355338, %v508_v5 }
 0x2fb   : > { %v579_v7 = vpop.f32.mrf.mxu0 }
 0x2fc   : > { %v513_v8 = vadd.f32 %v512_v6, %v330_v63  ;;  %v583_v9 = vmul.f32 0.35355338, %v579_v7 }
 0x2fe   : > { %v514_v10 = vsel %vm420_vm8, %v513_v8, -inf  ;;  %v584_v12 = vadd.f32 %v583_v9, %v330_v63 }
 0x2ff   : > { %515 = vmax.xlane.f32.xlu2 %v514_v10 }
 0x300   : > { %v585_v14 = vsel %vm420_vm8, %v584_v12, -inf }
 0x301   : > { %v510_v11 = vpop.f32.mrf.mxu3 }
 0x303   : > { %v581_v13 = vpop.f32.mrf.mxu0 }
 0x307   : > { %586 = vmax.xlane.f32.xlu2 %v585_v14 }
 0x309   : > { %v650_v15 = vpop.f32.mrf.mxu3 }
 0x30a   : > { %v654_v16 = vmul.f32 0.35355338, %v650_v15 }
 0x30c   : > { %v655_v17 = vadd.f32 %v654_v16, %v330_v63 }
 0x30e   : > { %v656_v18 = vsel %vm420_vm8, %v655_v17, -inf }
 0x30f   : > { %657 = vmax.xlane.f32.xlu0 %v656_v18 }
 0x311   : > { %v652_v19 = vpop.f32.mrf.mxu3 }
 0x364   : > { %v444_v20 = vpop.xlane.xlu1 %443 }
 0x365   : > { %v445_v21 = vsub.f32 %v441_v2, %v444_v20 }
 0x367   : > { %v446_v22 = vmul.f32 1.442695, %v445_v21 }
 0x369   : > { %1048 = vpow2.f32 %v446_v22 }
 0x36f   : > { %v1049_v23 = vpop.eup %1048 }
 0x370   : > { %v448_v24 = vsel %vm420_vm8, %v1049_v23, 0.0 }
 0x371   : > { %449 = vadd.xlane.f32.xlu1 %v448_v24 }
 0x372   : > { %v516_v25 = vpop.xlane.xlu2 %515 }
 0x373   : > { %v517_v26 = vsub.f32 %v513_v8, %v516_v25 }
 0x375   : > { %v518_v27 = vmul.f32 1.442695, %v517_v26 }
 0x377   : > { %1050 = vpow2.f32 %v518_v27 }
 0x37a   : > { %v587_v28 = vpop.xlane.xlu2 %586 }
 0x37b   : > { %v588_v29 = vsub.f32 %v584_v12, %v587_v28 }
 0x37d   : > { %v1537_v30 = vpop.eup %1050  ;;  %v589_v32 = vmul.f32 1.442695, %v588_v29 }
 0x37e   : > { %v520_v33 = vsel %vm420_vm8, %v1537_v30, 0.0 }
 0x37f   : > { %1052 = vpow2.f32 %v589_v32  ;;  %521 = vadd.xlane.f32.xlu2 %v520_v33 }
 0x382   : > { %v658_v34 = vpop.xlane.xlu0 %657 }
 0x383   : > { %v659_v35 = vsub.f32 %v655_v17, %v658_v34 }
 0x385   : > { %v1541_v36 = vpop.eup %1052  ;;  %v660_v37 = vmul.f32 1.442695, %v659_v35 }
 0x386   : > { %v591_v38 = vsel %vm420_vm8, %v1541_v36, 0.0 }
 0x387   : > { %1054 = vpow2.f32 %v660_v37  ;;  %592 = vadd.xlane.f32.xlu0 %v591_v38 }
 0x38a   : > { %467 = vrot.lane.b32.xlu1 %v1512_v49, %s1307_s12 }
 0x38d   : > { %v1546_v39 = vpop.eup %1054 }
 0x38e   : > { %v662_v40 = vsel %vm420_vm8, %v1546_v39, 0.0 }
 0x38f   : > { %663 = vadd.xlane.f32.xlu0 %v662_v40 }
 0x392   : > { %610 = vrot.lane.b32.xlu1 %v1512_v49, %s1308_s10 }
 0x397   : > { %539 = vrot.lane.b32.xlu2 %v1512_v49, %s1309_s11 }
 0x3a3   : > { %681 = vrot.lane.b32.xlu0 %v1512_v49, %s1310_s14 }
 0x3e4   : > { %v450_v41 = vpop.xlane.xlu1 %449 }
 0x3e5   : > { %1056 = vrcp.f32 %v450_v41  ;;  %v462_v46 = vand.u32 2147483648, %v450_v41  ;;  %vm456_vm10 = vweird.f32 %v450_v41  ;;  %v460_v50 = vand.u32 2147483647, %v450_v41 }
 0x3e7   : > { %v463_v52 = vor.u32 1.1754944e-38, %v462_v46  ;;  %vm461_vm12 = vcmp.eq.f32.partialorder %v460_v50, 8.507059e+37 }
 0x3eb   : > { %v1057_v42 = vpop.eup %1056 }
 0x3ec   : > { %v452_v43 = vmul.f32 %v1057_v42, %v450_v41  ;;  %vm457_vm9 = vweird.f32 %v1057_v42 }
 0x3ed   : > { %vm458_vm11 = vmor %vm456_vm10, %vm457_vm9 }
 0x3ee   : > { %v453_v44 = vsub.f32 1.0, %v452_v43 }
 0x3f0   : > { %v454_v45 = vmul.f32 %v1057_v42, %v453_v44 }
 0x3f2   : > { %v522_v47 = vpop.xlane.xlu2 %521  ;;  %v455_v48 = vadd.f32 %v1057_v42, %v454_v45 }
 0x3f3   : > { %1058 = vrcp.f32 %v522_v47  ;;  %v534_v3 = vand.u32 2147483648, %v522_v47  ;;  %vm528_vm15 = vweird.f32 %v522_v47  ;;  %v532_v6 = vand.u32 2147483647, %v522_v47 }
 0x3f4   : > { %v459_v51 = vsel %vm458_vm11, %v1057_v42, %v455_v48  ;;  %v942_v48 = vld [vmem:[#allocation8 + $0x8] sm:$0xff] }
 0x3f5   : > { %v464_v53 = vsel %vm461_vm12, %v463_v52, %v459_v51  ;;  %v535_v12 = vor.u32 1.1754944e-38, %v534_v3  ;;  %vm533_vm3 = vcmp.eq.f32.partialorder %v532_v6, 8.507059e+37  ;;  %746 = vmatpush.bf16.msra.mxu0 %v942_v48  ;;  %vm715_vm12 = vcmask 130048  }
 0x3f6   : > { %v465_v57 = vmul.f32 %v1049_v23, %v464_v53 }
 0x3f8   : > { %v466_v63 = vpack.c.bf16 %v465_v57, %v465_v57 }
 0x3f9   : > { %v1059_v54 = vpop.eup %1058 }
 0x3fa   : > { %v524_v49 = vmul.f32 %v1059_v54, %v522_v47  ;;  %v593_v55 = vpop.xlane.xlu0 %592  ;;  %v540_v56 = vpop.permute.xlu2 %539  ;;  %vm529_vm14 = vweird.f32 %v1059_v54 }
 0x3fb   : > { %1060 = vrcp.f32 %v593_v55  ;;  %v545_v62 = vsel %vm472_vm13, %v540_v56, 0  ;;  %vm530_vm1 = vmor %vm528_vm15, %vm529_vm14  ;;  %v605_v9 = vand.u32 2147483648, %v593_v55  ;;  %v603_v14 = vand.u32 2147483647, %v593_v55 }
 0x3fc   : > { %v525_v58 = vsub.f32 1.0, %v524_v49  ;;  %v468_v59 = vpop.permute.xlu1 %467  ;;  %vm599_vm4 = vweird.f32 %v593_v55  ;;  %v724_v56 = vperm.slane %v1506_v31, 3 }
 0x3fd   : > { %v474_v60 = vsel %vm472_vm13, %v468_v59, 0  ;;  %v606_v18 = vor.u32 1.1754944e-38, %v605_v9  ;;  %vm604_vm6 = vcmp.eq.f32.partialorder %v603_v14, 8.507059e+37 }
 0x3fe   : > { %v526_v61 = vmul.f32 %v1059_v54, %v525_v58  ;;  %483 = vmatpush.bf16.msra.mxu2 %v474_v60 }
 0x400   : > { %v527_v2 = vadd.f32 %v1059_v54, %v526_v61 }
 0x401   : > { %v1061_v1 = vpop.eup %1060  ;;  %919 = vmatmul.msk.bf16.vlgmr.msra.gmra.mxu2 %vm420_vm8, %v466_v63 }
 0x402   : > { %554 = vmatpush.bf16.msrb.mxu2 %v545_v62  ;;  %v595_v4 = vmul.f32 %v1061_v1, %v593_v55  ;;  %v664_v5 = vpop.xlane.xlu0 %663  ;;  %v531_v11 = vsel %vm530_vm1, %v1059_v54, %v527_v2  ;;  %vm600_vm2 = vweird.f32 %v1061_v1 }
 0x403   : > { %1062 = vrcp.f32 %v664_v5  ;;  %v536_v16 = vsel %vm533_vm3, %v535_v12, %v531_v11  ;;  %vm601_vm5 = vmor %vm599_vm4, %vm600_vm2  ;;  %v676_v29 = vand.u32 2147483648, %v664_v5  ;;  %vm670_vm9 = vweird.f32 %v664_v5 }
 0x404   : > { %v596_v7 = vsub.f32 1.0, %v595_v4  ;;  %v611_v8 = vpop.permute.xlu1 %610  ;;  %v537_v22 = vmul.f32 %v1537_v30, %v536_v16  ;;  %v674_v32 = vand.u32 2147483647, %v664_v5 }
 0x405   : > { %v616_v10 = vsel %vm472_vm13, %v611_v8, 0  ;;  %v677_v35 = vor.u32 1.1754944e-38, %v676_v29 }
 0x406   : > { %v597_v13 = vmul.f32 %v1061_v1, %v596_v7  ;;  %625 = vmatpush.bf16.msrb.mxu1 %v616_v10  ;;  %v538_v27 = vpack.c.bf16 %v537_v22, %v537_v22  ;;  %vm675_vm11 = vcmp.eq.f32.partialorder %v674_v32, 8.507059e+37 }
 0x408   : > { %v598_v15 = vadd.f32 %v1061_v1, %v597_v13 }
 0x409   : > { %v1063_v17 = vpop.eup %1062 }
 0x40a   : > { %v666_v19 = vmul.f32 %v1063_v17, %v664_v5  ;;  %v602_v20 = vsel %vm601_vm5, %v1061_v1, %v598_v15  ;;  %vm671_vm7 = vweird.f32 %v1063_v17 }
 0x40b   : > { %v607_v21 = vsel %vm604_vm6, %v606_v18, %v602_v20  ;;  %vm672_vm10 = vmor %vm670_vm9, %vm671_vm7 }
 0x40c   : > { %v667_v23 = vsub.f32 1.0, %v666_v19  ;;  %v608_v24 = vmul.f32 %v1541_v36, %v607_v21 }
 0x40e   : > { %v668_v25 = vmul.f32 %v1063_v17, %v667_v23  ;;  %v609_v26 = vpack.c.bf16 %v608_v24, %v608_v24 }
 0x410   : > { %923 = vmatmul.msk.bf16.vlgmr.msrb.gmra.mxu1 %vm420_vm8, %v609_v26  ;;  %v669_v28 = vadd.f32 %v1063_v17, %v668_v25 }
 0x411   : > { %921 = vmatmul.msk.bf16.vlgmr.msrb.gmra.mxu2 %vm420_vm8, %v538_v27 }
 0x412   : > { %v673_v33 = vsel %vm672_vm10, %v1063_v17, %v669_v28 }
 0x413   : > { %v678_v36 = vsel %vm675_vm11, %v677_v35, %v673_v33 }
 0x414   : > { %v679_v37 = vmul.f32 %v1546_v39, %v678_v36  ;;  %v941_v39 = vld [vmem:[#allocation8] sm:$0xff] }
 0x415   : > { %v682_v34 = vpop.permute.xlu0 %681  ;;  %747 = vmatpush.bf16.msra.mxu0 %v941_v39 }
 0x416   : > { %v687_v30 = vsel %vm472_vm13, %v682_v34, 0  ;;  %v680_v38 = vpack.c.bf16 %v679_v37, %v679_v37  ;;  %vm717_vm13 = vcmask 195584  }
 0x417   : > { %696 = vmatpush.bf16.msra.mxu2 %v687_v30 }
 0x421   : > { %925 = vmatmul.msk.bf16.vlgmr.msra.gmra.mxu2 %vm420_vm8, %v680_v38 }
 0x484   : > { %v485_v40 = vpop.f32.mrf.mxu2 }
 0x48c   : > { %v487_v41 = vpop.f32.mrf.mxu2 }
 0x48d   : > { %v627_v42 = vpop.f32.mrf.mxu1 }
 0x48e   : > { %707 = vrot.lane.b32.xlu1 %v627_v42, %s1311_s17 }
 0x494   : > { %v556_v43 = vpop.f32.mrf.mxu2 }
 0x495   : > { %703 = vrot.lane.b32.xlu2 %v556_v43, %s1312_s3  ;;  %v629_v44 = vpop.f32.mrf.mxu1 }
 0x49c   : > { %v558_v45 = vpop.f32.mrf.mxu2 }
 0x4a4   : > { %v698_v46 = vpop.f32.mrf.mxu2 }
 0x4a5   : > { %711 = vrot.lane.b32.xlu2 %v698_v46, %s1313_s13 }
 0x4ac   : > { %v700_v47 = vpop.f32.mrf.mxu2 }
 0x4ef   : > { %v704_v50 = vpop.permute.xlu2 %703 }
 0x4f0   : > { %v714_v51 = vsel %vm420_vm8, %v485_v40, %v704_v50 }
 0x4ff   : > { %v712_v53 = vpop.permute.xlu2 %711 }
 0x500   : > { %v708_v52 = vpop.permute.xlu1 %707 }
 0x501   : > { %v716_v54 = vsel %vm715_vm12, %v714_v51, %v708_v52 }
 0x502   : > { %v718_v49 = vsel %vm717_vm13, %v716_v54, %v712_v53 }
 0x503   : > { %v719_v55 = vpack.c.bf16 %v718_v49, %v718_v49 }
 0x505   : > { %934 = vmatmul.msk.bf16.vlgmr.msra.gmra.mxu0 %vm332_vm0, %v719_v55 }
 0x582   : > { %v749_v57 = vpop.f32.mrf.mxu0 }
 0x583   : > { %v750_v58 = vadd.f32 %v749_v57, %v724_v56 }
 0x585   : > { %v753_v59 = vadd.f32 %v750_v58, %v1500_v0 }
 0x587   : > { %754 = vst.msk [vmem:[%s327_s29] sm:$0xff] %vm332_vm0, %v753_v59 }
 0x588   : > { %1241 = shalt.err (!%p1238_p10)
}
 0x589   : > { %959 = dma.vmem_to_hbm [thread:$0]  (%p1424_p0), %s769_s16, 128, %s771_s24, %s756_s23  }
 0x58a   : > { %v751_v0 = vpop.f32.mrf.mxu0 }
 0x58b PF: > { %s782_s2 = sand.u32 1, %s1280_s18   ;;  %p1623_p12 = scmp.ge.s32.totalorder %s1292_s21, 2 }
 0x58c   : > { %s783_s11 = scalar_lea.sflag [#allocation4], %s782_s2 }
 0x58d   : > { %p979_p5 = pnand %p1623_p12, %p1430_p6 }
 0x58f   : > { %p980_p11 = pneg %p979_p5 }
 0x591   : > { %1275 = dma.done.wait (%p980_p11), %s783_s11, 128  }
 0x592   : > { %1277 = vsyncadd (%p980_p11), %s783_s11, 4294967168  ;;  %s1624_s14 = sld [smem:[#allocation17_spill]]  ;;  %p22_p2 = scmp.ge.s32.totalorder %s1400_s22, 4  }
 0x593   : > { %s1625_s18 = smov %s1284_s19  ;;  %s1626_s19 = smov %s1288_s20 }
 0x594   : > { %s1628_s21 = smov %s1400_s22  ;;  %24 = sbr.rel (!%p22_p2) target bundleno = 12 (0xc), region = 110 }
 0x598   : > { %s1627_s20 = smov %s1624_s14 }
 0x599   :  { %789 = vsyncpa [#allocation3], 1 }
 0x59a   :  { %791 = vsyncpa [#allocation3 + $0x1], 1 }
 0x59b   :  { %792 = vsyncpa [#allocation6], 1 }
 0x59c   :  { %794 = vsyncpa [#allocation6 + $0x1], 1 }
 0x59d   :  { %795 = vsyncpa [#allocation9], 1 }
 0x59e   :  { %796 = vsyncpa [#allocation4], 1 }
 0x59f   :  { %798 = vsyncpa [#allocation4 + $0x1], 1 }

</bundles_post_ra>
